<compile_context>
chip_gen: v5e
topology: v5e:2x2
jax: 0.10.0
libtpu: 0.0.40
codegen_flags: <defaults>
</compile_context>

<pallas_src>
import functools

import jax
import jax.numpy as jnp
from jax.experimental import pallas as pl
from jax.experimental.pallas import tpu as pltpu

IN_FEATURES = 512
OUT_FEATURES = 10
LANE_OUT = 128           # lane-dense padded output width
DEFAULT_BLOCK_B = 1024   # batch-tile upper bound (rows)


def _round_up(x, m):
    return ((x + m - 1) // m) * m


def _type_classifier_kernel(x_ref, w_ref, b_ref, o_ref):
    # x_ref: [TB, 512]   w_ref: [512, 128] (K-major, N on lanes)
    # b_ref: [1, 128]    o_ref: [TB, 128]
    logits = jnp.dot(x_ref[...], w_ref[...], preferred_element_type=jnp.float32)
    o_ref[...] = jax.nn.sigmoid(logits + b_ref[...]).astype(o_ref.dtype)


def prepare_type_classifier_params(weight, bias):
    """One-time prep of torch-layout params (do at parameter-load time).

    weight: [10, 512] (torch nn.Linear layout), bias: [10].
    Returns (w_t [512, 128], b_pad [1, 128]) — out-dim zero-padded to a full
    128-lane slab and the weight transposed to the MXU-native [K, N] layout.
    """
    w_pad = jnp.pad(weight, ((0, LANE_OUT - OUT_FEATURES), (0, 0)))   # [128, 512]
    w_t = jnp.transpose(w_pad)                                        # [512, 128]
    b_pad = jnp.pad(bias, (0, LANE_OUT - OUT_FEATURES)).reshape(1, LANE_OUT)
    return w_t, b_pad


@functools.partial(jax.jit, static_argnames=("block_b",))
def type_classifier_forward(x, w_t, b_pad, *, block_b=DEFAULT_BLOCK_B):
    """x: [B, 512] f32; (w_t, b_pad) from prepare_type_classifier_params.

    Returns sigmoid(x @ W^T + b): [B, 10] f32.
    """
    B = x.shape[0]

    # Batch tile: multiple of 8 sublanes, <= block_b, and <= ~B/2 so large
    # batches always produce >= 2 "parallel" tiles (both v7x TensorCores).
    TB = max(8, min(_round_up(block_b, 8), _round_up(pl.cdiv(B, 2), 8)))
    grid = (pl.cdiv(B, TB),)   # ragged last block is masked on store

    out_padded = pl.pallas_call(
        _type_classifier_kernel,
        out_shape=jax.ShapeDtypeStruct((B, LANE_OUT), jnp.float32),
        grid_spec=pltpu.PrefetchScalarGridSpec(
            num_scalar_prefetch=0,
            grid=grid,
            in_specs=[
                pl.BlockSpec((TB, IN_FEATURES), lambda i: (i, 0)),        # x tile (streamed)
                pl.BlockSpec((IN_FEATURES, LANE_OUT), lambda i: (0, 0)),  # weight (resident)
                pl.BlockSpec((1, LANE_OUT), lambda i: (0, 0)),            # bias (resident)
            ],
            out_specs=pl.BlockSpec((TB, LANE_OUT), lambda i: (i, 0)),
        ),
        compiler_params=pltpu.CompilerParams(
            dimension_semantics=("parallel",),   # shard batch tiles across TCs (v7x)
        ),
    )(x, w_t, b_pad)

    # Padded lane columns hold sigmoid(0)=0.5; drop them here (single tiny slice).
    return out_padded[:, :OUT_FEATURES]


if __name__ == "__main__":
    key = jax.random.PRNGKey(0)
    k_x, k_w, k_b = jax.random.split(key, 3)

    # Deterministic parameter init (mimics nn.Linear's uniform(-1/sqrt(fan_in), +)).
    bound = 1.0 / (IN_FEATURES ** 0.5)
    weight = jax.random.uniform(
        k_w, (OUT_FEATURES, IN_FEATURES), jnp.float32, -bound, bound
    )
    bias = jax.random.uniform(k_b, (OUT_FEATURES,), jnp.float32, -bound, bound)
    w_t, b_pad = prepare_type_classifier_params(weight, bias)

    def reference(x):
        logits = jax.lax.dot_general(
            x, weight,
            dimension_numbers=(((1,), (1,)), ((), ())),   # x @ weight.T
            precision=jax.lax.Precision.HIGHEST,
            preferred_element_type=jnp.float32,
        ) + bias
        return jax.nn.sigmoid(logits)

    # Small batch (single tile).
    B = 8
    x = jax.random.normal(k_x, (B, IN_FEATURES), jnp.float32)
    out = type_classifier_forward(x, w_t, b_pad)
    jax.block_until_ready(out)
    assert out.shape == (B, OUT_FEATURES)
    assert jnp.allclose(out, reference(x), atol=1e-4, rtol=1e-4), "mismatch (B=8)"

    # Ragged multi-tile batch: B=37 -> TB=24, grid=2, last block masked on store.
    B2 = 37
    x2 = jax.random.normal(jax.random.PRNGKey(1), (B2, IN_FEATURES), jnp.float32)
    out2 = type_classifier_forward(x2, w_t, b_pad)
    jax.block_until_ready(out2)
    assert out2.shape == (B2, OUT_FEATURES)
    assert jnp.allclose(out2, reference(x2), atol=1e-4, rtol=1e-4), "mismatch (B=37)"

    print("KERNEL_OK")
</pallas_src>

<mosaic_0001>
module attributes {stable_mosaic.version = 11 : i64} {
  func.func @_type_classifier_kernel(%arg0: i32, %arg1: memref<8x512xf32, #tpu.memory_space<vmem>>, %arg2: memref<512x128xf32, #tpu.memory_space<vmem>>, %arg3: memref<1x128xf32, #tpu.memory_space<vmem>>, %arg4: memref<8x128xf32, #tpu.memory_space<vmem>>) attributes {dimension_semantics = [#tpu.dimension_semantics<parallel>], iteration_bounds = array<i64: 1>, scalar_prefetch = 0 : i64, scratch_operands = 0 : i64, tpu.core_type = #tpu.core_type<tc>, window_params = [{transform_indices = @transform_0, window_bounds = array<i64: 8, 512>}, {pipeline_mode = #tpu.pipeline_mode<synchronous>, transform_indices = @transform_1, window_bounds = array<i64: 512, 128>}, {pipeline_mode = #tpu.pipeline_mode<synchronous>, transform_indices = @transform_2, window_bounds = array<i64: 1, 128>}, {transform_indices = @transform_3, window_bounds = array<i64: 8, 128>}]} {
    %c0 = arith.constant 0 : index
    %c0_0 = arith.constant 0 : index
    %0 = vector.load %arg1[%c0, %c0_0] : memref<8x512xf32, #tpu.memory_space<vmem>>, vector<8x512xf32>
    %c0_1 = arith.constant 0 : index
    %c0_2 = arith.constant 0 : index
    %1 = vector.load %arg2[%c0_1, %c0_2] : memref<512x128xf32, #tpu.memory_space<vmem>>, vector<512x128xf32>
    %cst = arith.constant dense<0.000000e+00> : vector<8x128xf32>
    %2 = tpu.matmul %0, %1, %cst {dimension_numbers = #tpu.dot_dimension_numbers<[1], [0], [0], [1], [0, 0, 1, 1], [], []>} : vector<8x512xf32>, vector<512x128xf32>, vector<8x128xf32> -> vector<8x128xf32>
    %c0_3 = arith.constant 0 : index
    %c0_4 = arith.constant 0 : index
    %3 = vector.load %arg3[%c0_3, %c0_4] : memref<1x128xf32, #tpu.memory_space<vmem>>, vector<1x128xf32>
    %4 = vector.broadcast %3 : vector<1x128xf32> to vector<8x128xf32>
    %5 = arith.addf %2, %4 : vector<8x128xf32>
    %6 = arith.negf %5 : vector<8x128xf32>
    %7 = math.exp %6 : vector<8x128xf32>
    %cst_5 = arith.constant 1.000000e+00 : f32
    %8 = vector.broadcast %cst_5 : f32 to vector<8x128xf32>
    %9 = arith.addf %8, %7 : vector<8x128xf32>
    %10 = arith.divf %8, %9 : vector<8x128xf32>
    %c0_6 = arith.constant 0 : index
    %c0_7 = arith.constant 0 : index
    %11 = vector.load %arg4[%c0_6, %c0_7] : memref<8x128xf32, #tpu.memory_space<vmem>>, vector<8x128xf32>
    tpu.vector_store %arg4[%c0_6, %c0_7], %10 {strides = array<i32>} : memref<8x128xf32, #tpu.memory_space<vmem>>, vector<8x128xf32>,
    return
  }
  func.func @transform_0(%arg0: i32) -> (i32, i32) {
    %c0_i32 = arith.constant 0 : i32
    %c0_i32_0 = arith.constant 0 : i32
    return %arg0, %c0_i32 : i32, i32
  }
  func.func @transform_1(%arg0: i32) -> (i32, i32) {
    %c0_i32 = arith.constant 0 : i32
    %c0_i32_0 = arith.constant 0 : i32
    %c0_i32_1 = arith.constant 0 : i32
    return %c0_i32, %c0_i32_0 : i32, i32
  }
  func.func @transform_2(%arg0: i32) -> (i32, i32) {
    %c0_i32 = arith.constant 0 : i32
    %c0_i32_0 = arith.constant 0 : i32
    %c0_i32_1 = arith.constant 0 : i32
    return %c0_i32, %c0_i32_0 : i32, i32
  }
  func.func @transform_3(%arg0: i32) -> (i32, i32) {
    %c0_i32 = arith.constant 0 : i32
    %c0_i32_0 = arith.constant 0 : i32
    return %arg0, %c0_i32 : i32, i32
  }
}

</mosaic_0001>

<bundles_post_ra>
// kernel: type_classifier_forward.1
= control target key start
LH: loop header
LB: loop body
LE: loop exit
PB: predicated region body
PF: predicated region fallthrough
CT: control target
= control target key end

     0   :  { %8 = vsyncpa [#allocation3], 0  ;;  %s361_s0 = inlined_call_operand.hbm [shape: f32[8,512], index: 0, kind: input, shape index: {}]   ;;  %s362_s1 = inlined_call_operand.hbm [shape: f32[512,128], index: 1, kind: input, shape index: {}]   ;;  %s363_s2 = inlined_call_operand.vmem [shape: f32[1,128], index: 2, kind: input, shape index: {}]   ;;  %s364_s3 = inlined_call_operand.hbm [shape: f32[8,128], index: 3, kind: output, shape index: {}]  }
   0x1   :  { %9 = vsyncpa [#allocation6], 0 }
   0x2   :  { %10 = vsyncpa [#allocation4], 0  ;;  %s16_s14 = sshll.u32 %s361_s0, 4  ;;  %s324_s15 = smov [#allocation2]   ;;  %s17_s14 = int_to_ptr.hbm [resolvable:$true] %s16_s14 }
   0x3   :  { %s18_s16 = sshll.u32 %s324_s15, 4  ;;  %s26_s19 = sshll.u32 %s362_s1, 4  ;;  %s19_s16 = int_to_ptr.vmem [resolvable:$true] %s18_s16  ;;  %s27_s19 = int_to_ptr.hbm [resolvable:$true] %s26_s19 }
   0x4   :  { %21 = dma.hbm_to_vmem [thread:$0]  %s17_s14, 512, %s19_s16, [#allocation3]  }
   0x5   :  { %s325_s20 = smov [#allocation5]   ;;  %s326_s22 = smov 128  }
   0x6   :  { %s28_s21 = sshll.u32 %s325_s20, 4  ;;  %s327_s23 = smov 8   ;;  %s29_s21 = int_to_ptr.vmem [resolvable:$true] %s28_s21 }
   0x7   :  { %34 = dma.hbm_to_vmem [thread:$0]  %s27_s19, 8192, %s29_s21, [#allocation6], %s326_s22, %s326_s22, %s327_s23  }
   0x8   :  { %318 = dma.done.wait [#allocation3], 512  }
   0x9   :  { %319 = vsyncadd [#allocation3], 4294966784 }
   0xa   :  { %320 = dma.done.wait [#allocation6], 8192  }
   0xb   :  { %321 = vsyncadd [#allocation6], 4294959104  ;;  %v96_v0 = vld [vmem:[#allocation5 + $0x178] sm:$0xff]  ;;  %v95_v2 = vld [vmem:[#allocation5 + $0x170] sm:$0xff]  ;;  %s224_s27 = sshll.u32 %s364_s3, 4  ;;  %s225_s27 = int_to_ptr.hbm [resolvable:$true] %s224_s27 }
   0xc   :  { %v64_v1 = vld [vmem:[#allocation5 + $0x78] sm:$0xff]  ;;  %157 = vmatpush.msra.mxu2 %v96_v0  ;;  %v63_v4 = vld [vmem:[#allocation5 + $0x70] sm:$0xff]  ;;  %v94_v6 = vld [vmem:[#allocation5 + $0x168] sm:$0xff] }
   0xd   :  { %117 = vmatpush.msra.mxu0 %v64_v1  ;;  %v112_v3 = vld [vmem:[#allocation5 + $0x1f8] sm:$0xff]  ;;  %v111_v7 = vld [vmem:[#allocation5 + $0x1f0] sm:$0xff]  ;;  %v62_v8 = vld [vmem:[#allocation5 + $0x68] sm:$0xff] }
   0xe   :  { %v80_v5 = vld [vmem:[#allocation5 + $0xf8] sm:$0xff]  ;;  %177 = vmatpush.msra.mxu3 %v112_v3  ;;  %158 = vmatpush.msra.mxu2 %v95_v2  ;;  %v79_v9 = vld [vmem:[#allocation5 + $0xf0] sm:$0xff]  ;;  %v110_v10 = vld [vmem:[#allocation5 + $0x1e8] sm:$0xff] }
   0xf   :  { %137 = vmatpush.msra.mxu1 %v80_v5  ;;  %118 = vmatpush.msra.mxu0 %v63_v4  ;;  %v93_v11 = vld [vmem:[#allocation5 + $0x160] sm:$0xff]  ;;  %v78_v13 = vld [vmem:[#allocation5 + $0xe8] sm:$0xff]  ;;  %v92_v16 = vld [vmem:[#allocation5 + $0x158] sm:$0xff] }
  0x10   :  { %178 = vmatpush.msra.mxu3 %v111_v7  ;;  %v61_v12 = vld [vmem:[#allocation5 + $0x60] sm:$0xff]  ;;  %159 = vmatpush.msra.mxu2 %v94_v6  ;;  %v60_v17 = vld [vmem:[#allocation5 + $0x58] sm:$0xff]  ;;  %v91_v20 = vld [vmem:[#allocation5 + $0x150] sm:$0xff] }
  0x11   :  { %138 = vmatpush.msra.mxu1 %v79_v9  ;;  %119 = vmatpush.msra.mxu0 %v62_v8  ;;  %v109_v14 = vld [vmem:[#allocation5 + $0x1e0] sm:$0xff]  ;;  %v108_v18 = vld [vmem:[#allocation5 + $0x1d8] sm:$0xff]  ;;  %v59_v21 = vld [vmem:[#allocation5 + $0x50] sm:$0xff] }
  0x12   :  { %v77_v15 = vld [vmem:[#allocation5 + $0xe0] sm:$0xff]  ;;  %179 = vmatpush.msra.mxu3 %v110_v10  ;;  %160 = vmatpush.msra.mxu2 %v93_v11  ;;  %v76_v19 = vld [vmem:[#allocation5 + $0xd8] sm:$0xff]  ;;  %v107_v22 = vld [vmem:[#allocation5 + $0x1d0] sm:$0xff] }
  0x13   :  { %139 = vmatpush.msra.mxu1 %v78_v13  ;;  %120 = vmatpush.msra.mxu0 %v61_v12  ;;  %v75_v23 = vld [vmem:[#allocation5 + $0xd0] sm:$0xff]  ;;  %v90_v24 = vld [vmem:[#allocation5 + $0x148] sm:$0xff]  ;;  %v89_v28 = vld [vmem:[#allocation5 + $0x140] sm:$0xff] }
  0x14   :  { %180 = vmatpush.msra.mxu3 %v109_v14  ;;  %161 = vmatpush.msra.mxu2 %v92_v16  ;;  %v58_v25 = vld [vmem:[#allocation5 + $0x48] sm:$0xff]  ;;  %v57_v29 = vld [vmem:[#allocation5 + $0x40] sm:$0xff]  ;;  %v88_v32 = vld [vmem:[#allocation5 + $0x138] sm:$0xff] }
  0x15   :  { %140 = vmatpush.msra.mxu1 %v77_v15  ;;  %121 = vmatpush.msra.mxu0 %v60_v17  ;;  %v106_v26 = vld [vmem:[#allocation5 + $0x1c8] sm:$0xff]  ;;  %v105_v30 = vld [vmem:[#allocation5 + $0x1c0] sm:$0xff]  ;;  %v56_v33 = vld [vmem:[#allocation5 + $0x38] sm:$0xff] }
  0x16   :  { %181 = vmatpush.msra.mxu3 %v108_v18  ;;  %162 = vmatpush.msra.mxu2 %v91_v20  ;;  %v74_v27 = vld [vmem:[#allocation5 + $0xc8] sm:$0xff]  ;;  %v73_v31 = vld [vmem:[#allocation5 + $0xc0] sm:$0xff]  ;;  %v104_v34 = vld [vmem:[#allocation5 + $0x1b8] sm:$0xff] }
  0x17   :  { %141 = vmatpush.msra.mxu1 %v76_v19  ;;  %122 = vmatpush.msra.mxu0 %v59_v21  ;;  %v72_v35 = vld [vmem:[#allocation5 + $0xb8] sm:$0xff]  ;;  %v87_v36 = vld [vmem:[#allocation5 + $0x130] sm:$0xff]  ;;  %v86_v40 = vld [vmem:[#allocation5 + $0x128] sm:$0xff] }
  0x18   :  { %182 = vmatpush.msra.mxu3 %v107_v22  ;;  %163 = vmatpush.msra.mxu2 %v90_v24  ;;  %v55_v37 = vld [vmem:[#allocation5 + $0x30] sm:$0xff]  ;;  %v54_v41 = vld [vmem:[#allocation5 + $0x28] sm:$0xff]  ;;  %v85_v44 = vld [vmem:[#allocation5 + $0x120] sm:$0xff] }
  0x19   :  { %142 = vmatpush.msra.mxu1 %v75_v23  ;;  %123 = vmatpush.msra.mxu0 %v58_v25  ;;  %v103_v38 = vld [vmem:[#allocation5 + $0x1b0] sm:$0xff]  ;;  %v102_v42 = vld [vmem:[#allocation5 + $0x1a8] sm:$0xff]  ;;  %v53_v45 = vld [vmem:[#allocation5 + $0x20] sm:$0xff] }
  0x1a   :  { %183 = vmatpush.msra.mxu3 %v106_v26  ;;  %164 = vmatpush.msra.mxu2 %v89_v28  ;;  %v71_v39 = vld [vmem:[#allocation5 + $0xb0] sm:$0xff]  ;;  %v70_v43 = vld [vmem:[#allocation5 + $0xa8] sm:$0xff]  ;;  %v101_v46 = vld [vmem:[#allocation5 + $0x1a0] sm:$0xff] }
  0x1b   :  { %143 = vmatpush.msra.mxu1 %v74_v27  ;;  %124 = vmatpush.msra.mxu0 %v57_v29  ;;  %v69_v47 = vld [vmem:[#allocation5 + $0xa0] sm:$0xff]  ;;  %v84_v48 = vld [vmem:[#allocation5 + $0x118] sm:$0xff]  ;;  %v83_v52 = vld [vmem:[#allocation5 + $0x110] sm:$0xff] }
  0x1c   :  { %184 = vmatpush.msra.mxu3 %v105_v30  ;;  %165 = vmatpush.msra.mxu2 %v88_v32  ;;  %v52_v49 = vld [vmem:[#allocation5 + $0x18] sm:$0xff]  ;;  %v51_v53 = vld [vmem:[#allocation5 + $0x10] sm:$0xff]  ;;  %v82_v56 = vld [vmem:[#allocation5 + $0x108] sm:$0xff] }
  0x1d   :  { %144 = vmatpush.msra.mxu1 %v73_v31  ;;  %125 = vmatpush.msra.mxu0 %v56_v33  ;;  %v100_v50 = vld [vmem:[#allocation5 + $0x198] sm:$0xff]  ;;  %v99_v54 = vld [vmem:[#allocation5 + $0x190] sm:$0xff]  ;;  %v50_v57 = vld [vmem:[#allocation5 + $0x8] sm:$0xff] }
  0x1e   :  { %185 = vmatpush.msra.mxu3 %v104_v34  ;;  %166 = vmatpush.msra.mxu2 %v87_v36  ;;  %v68_v51 = vld [vmem:[#allocation5 + $0x98] sm:$0xff]  ;;  %v67_v55 = vld [vmem:[#allocation5 + $0x90] sm:$0xff]  ;;  %v98_v58 = vld [vmem:[#allocation5 + $0x188] sm:$0xff] }
  0x1f   :  { %145 = vmatpush.msra.mxu1 %v72_v35  ;;  %126 = vmatpush.msra.mxu0 %v55_v37  ;;  %v66_v59 = vld [vmem:[#allocation5 + $0x88] sm:$0xff]  ;;  %v81_v60 = vld [vmem:[#allocation5 + $0x100] sm:$0xff]  ;;  %v47_v62 = vld [vmem:[#allocation2 + $0x10] sm:$0xff] }
  0x20   :  { %186 = vmatpush.msra.mxu3 %v103_v38  ;;  %167 = vmatpush.msra.mxu2 %v86_v40  ;;  %v49_v61 = vld [vmem:[#allocation5] sm:$0xff]  ;;  %v48_v1 = vld [vmem:[#allocation2 + $0x18] sm:$0xff]  ;;  %v46_v3 = vld [vmem:[#allocation2 + $0x8] sm:$0xff] }
  0x21   :  { %146 = vmatpush.msra.mxu1 %v71_v39  ;;  %127 = vmatpush.msra.mxu0 %v54_v41  ;;  %v97_v63 = vld [vmem:[#allocation5 + $0x180] sm:$0xff] }
  0x22   :  { %187 = vmatpush.msra.mxu3 %v102_v42  ;;  %168 = vmatpush.msra.mxu2 %v85_v44  ;;  %v45_v0 = vld [vmem:[#allocation2] sm:$0xff] }
  0x23   :  { %147 = vmatpush.msra.mxu1 %v70_v43  ;;  %128 = vmatpush.msra.mxu0 %v53_v45  ;;  %v65_v2 = vld [vmem:[#allocation5 + $0x80] sm:$0xff] }
  0x24   :  { %188 = vmatpush.msra.mxu3 %v101_v46  ;;  %169 = vmatpush.msra.mxu2 %v84_v48  ;;  %v241_v4 = vld [vmem:[%s363_s2] ss:$0 sm:$0xff]  ;;  %s328_s2 = smov [#allocation7]  }
  0x25   :  { %148 = vmatpush.msra.mxu1 %v69_v47  ;;  %129 = vmatpush.msra.mxu0 %v52_v49  ;;  %s222_s24 = sshll.u32 %s328_s2, 4  ;;  %s223_s24 = int_to_ptr.vmem [resolvable:$true] %s222_s24 }
  0x26   :  { %189 = vmatpush.msra.mxu3 %v100_v50  ;;  %170 = vmatpush.msra.mxu2 %v83_v52 }
  0x27   :  { %149 = vmatpush.msra.mxu1 %v68_v51  ;;  %130 = vmatpush.msra.mxu0 %v51_v53 }
  0x28   :  { %190 = vmatpush.msra.mxu3 %v99_v54  ;;  %171 = vmatpush.msra.mxu2 %v82_v56 }
  0x29   :  { %150 = vmatpush.msra.mxu1 %v67_v55  ;;  %131 = vmatpush.msra.mxu0 %v50_v57 }
  0x2a   :  { %191 = vmatpush.msra.mxu3 %v98_v58  ;;  %172 = vmatpush.msra.mxu2 %v81_v60 }
  0x2b   :  { %151 = vmatpush.msra.mxu1 %v66_v59  ;;  %132 = vmatpush.msra.mxu0 %v49_v61 }
  0x2c   :  { %173 = vmatmul.f32.vlgmr.msra.gmra.mxu2 %v47_v62  ;;  %192 = vmatpush.msra.mxu3 %v97_v63 }
  0x2d   :  { %133 = vmatmul.f32.vlgmr.msra.gmra.mxu0 %v45_v0  ;;  %193 = vmatmul.f32.vlgmr.msra.gmra.mxu3 %v48_v1 }
  0x2e   :  { %152 = vmatpush.msra.mxu1 %v65_v2 }
  0x2f   :  { %153 = vmatmul.f32.vlgmr.msra.gmra.mxu1 %v46_v3 }
  0xaa   :  { %v134_v5 = vpop.f32.mrf.mxu0 }
  0xab   :  { %v135_v6 = vadd.f32 %v241_v4, %v134_v5 }
  0xac   :  { %v154_v7 = vpop.f32.mrf.mxu1 }
  0xad   :  { %v155_v8 = vadd.f32 %v154_v7, %v135_v6 }
  0xaf   :  { %v174_v9 = vpop.f32.mrf.mxu2 }
  0xb0   :  { %v175_v10 = vadd.f32 %v174_v9, %v155_v8  ;;  %v194_v11 = vpop.f32.mrf.mxu3 }
  0xb2   :  { %v195_v12 = vadd.f32 %v194_v11, %v175_v10 }
  0xb4   :  { %v235_v13 = vmul.f32 -1.442695, %v195_v12 }
  0xb6   :  { %242 = vpow2.f32 %v235_v13 }
  0xbc   :  { %v243_v14 = vpop.eup %242 }
  0xbd   :  { %v200_v15 = vadd.f32 1.0, %v243_v14 }
  0xbf   :  { %244 = vrcp.f32 %v200_v15  ;;  %v212_v19 = vand.u32 2147483648, %v200_v15  ;;  %v210_v21 = vand.u32 2147483647, %v200_v15  ;;  %vm206_vm1 = vweird.f32 %v200_v15 }
  0xc1   :  { %v213_v23 = vor.u32 1.1754944e-38, %v212_v19  ;;  %vm211_vm3 = vcmp.eq.f32.partialorder %v210_v21, 8.507059e+37 }
  0xc5   :  { %v245_v16 = vpop.eup %244 }
  0xc6   :  { %v202_v17 = vmul.f32 %v245_v16, %v200_v15  ;;  %vm207_vm0 = vweird.f32 %v245_v16 }
  0xc7   :  { %vm208_vm2 = vmor %vm206_vm1, %vm207_vm0 }
  0xc8   :  { %v203_v18 = vsub.f32 1.0, %v202_v17 }
  0xca   :  { %v204_v20 = vmul.f32 %v245_v16, %v203_v18 }
  0xcc   :  { %v205_v22 = vadd.f32 %v245_v16, %v204_v20 }
  0xce   :  { %v209_v24 = vsel %vm208_vm2, %v245_v16, %v205_v22 }
  0xcf   :  { %v214_v25 = vsel %vm211_vm3, %v213_v23, %v209_v24 }
  0xd0   :  { %216 = vst [vmem:[#allocation7] sm:$0xff] %v214_v25 }
  0xd1   :  { %227 = dma.vmem_to_hbm [thread:$0]  %s223_s24, 128, %s225_s27, [#allocation4]  }
  0xd2   :  { %322 = dma.done.wait [#allocation4], 128  }
  0xd3   :  { %323 = vsyncadd [#allocation4], 4294967168 }
  0xd4   :  { %232 = vsyncpa [#allocation3], 1 }
  0xd5   :  { %233 = vsyncpa [#allocation6], 1 }
  0xd6   :  { %234 = vsyncpa [#allocation4], 1 }

</bundles_post_ra>
